<compile_context>
chip_gen: v6e
topology: v6e:2x2x1
jax: 0.10.0
libtpu: 0.0.40
codegen_flags: <defaults>
</compile_context>

<pallas_src>
import jax
import jax.numpy as jnp
from jax.experimental import pallas as pl
from jax.experimental.pallas import tpu as pltpu

_EPS = 1e-5          # nn.BatchNorm2d default eps
_LANE = 128          # TPU lane width: keep channel dims lane-dense

_VMEM_LIMIT_CACHE = None


def _vmem_limit_bytes():
    """Generation-aware scoped-VMEM limit (48 MiB on v5e/v6e, ~40 MiB on v7x)."""
    global _VMEM_LIMIT_CACHE
    if _VMEM_LIMIT_CACHE is None:
        base = 48 * 1024 * 1024
        try:
            cap = pltpu.get_tpu_info().vmem_capacity_bytes
            _VMEM_LIMIT_CACHE = int(min(base, 0.625 * cap))
        except Exception:  # pragma: no cover - fall back on any query issue
            _VMEM_LIMIT_CACHE = base
    return _VMEM_LIMIT_CACHE


# ------------------------------ small helpers -------------------------------

def _round_up(x, m):
    return (x + m - 1) // m * m


def _pad_channels(x, cp):
    c = x.shape[-1]
    if c == cp:
        return x
    return jnp.pad(x, [(0, 0)] * (x.ndim - 1) + [(0, cp - c)])


def _pick_divisor(n, target):
    """Largest divisor of n that is <= target (>= 1)."""
    target = max(1, min(n, target))
    best = 1
    for d in range(1, target + 1):
        if n % d == 0:
            best = d
    return best


def _pick_tile_rows(m, target):
    """Largest multiple-of-8 divisor of m that is <= max(8, target); else m."""
    best = None
    for d in range(8, min(m, max(8, target)) + 1, 8):
        if m % d == 0:
            best = d
    return best if best is not None else m


def create_neuron_mask(num_filters, keep_ratio):
    num_kept = int(num_filters * keep_ratio)
    return (jnp.arange(num_filters) < num_kept).astype(jnp.float32)


# ------------------- wrapper-side layout prep (kw-fold) ----------------------

def _fold_input(x, k, stride, padding):
    """(N,H,W,Ca) -> flattened (N, nrp*hq*Wo, Kp) bf16 folded activation.

    Column (kw) taps are folded into the channel dim and stride row-phases are
    folded via one reshape/transpose, so the kernel only slices contiguous
    full-width row slabs (no in-kernel relayout).
    """
    n, h, w, ca = x.shape
    s, p = stride, padding
    ho = (h + 2 * p - k) // s + 1
    wo = (w + 2 * p - k) // s + 1

    x = x.astype(jnp.bfloat16)                     # bf16 BEFORE any padding
    xp = jnp.pad(x, ((0, 0), (p, p), (p, p), (0, 0))) if p else x

    # kw fold: channel index = kw * ca + ci.
    cols = [xp[:, :, kw:kw + (wo - 1) * s + 1:s, :] for kw in range(k)]
    xf = cols[0] if k == 1 else jnp.concatenate(cols, axis=-1)   # (N,Hp,Wo,k*ca)
    kraw = k * ca
    kp = _round_up(kraw, _LANE)
    if kp != kraw:
        xf = jnp.pad(xf, ((0, 0), (0, 0), (0, 0), (0, kp - kraw)))

    # Row phases (stride) via a single space-to-depth reshape/transpose.
    nrp = min(s, k)
    hq = ho + (k - 1) // s
    if s == 1:
        x_ph = xf                                   # hq == Hp
    else:
        rows_needed = hq * s
        hp = xf.shape[1]
        if rows_needed > hp:
            xf = jnp.pad(xf, ((0, 0), (0, rows_needed - hp), (0, 0), (0, 0)))
        else:
            xf = xf[:, :rows_needed]
        x_ph = xf.reshape(n, hq, s, wo, kp).transpose(0, 2, 1, 3, 4)[:, :nrp]
        x_ph = x_ph.reshape(n, nrp * hq, wo, kp)

    x_ph = x_ph.reshape(n, -1, kp)                  # (N, nrp*hq*Wo, Kp)
    return x_ph, (ho, wo, hq, kp)


def _fold_weights(w_oihw, mask, ca, kp, cp_out):
    """OIHW -> (K, Kp, Cp_out) bf16 with mask folded in and kw packed into K."""
    cout, cin, k, _ = w_oihw.shape
    wm = w_oihw.astype(jnp.float32) * mask[:, None, None, None]
    wt = jnp.transpose(wm, (2, 3, 1, 0))                        # (KH, KW, CI, CO)
    wt = jnp.pad(wt, ((0, 0), (0, 0), (0, ca - cin), (0, cp_out - cout)))
    wt = wt.reshape(k, k * ca, cp_out)                          # kw outer, ci inner
    if kp != k * ca:
        wt = jnp.pad(wt, ((0, 0), (0, kp - k * ca), (0, 0)))
    return wt.astype(jnp.bfloat16)


# --------------------- conv (+ fused BN-stats) Pallas kernel -----------------

def masked_conv2d_bn_stats(x, w_oihw, mask, *, stride, padding,
                           row_tile_target=256):
    """Direct masked conv with fused per-tile BN partial statistics.

    x:       (N, H, W, Ca) NHWC; real input channels are the first `cin`.
    w_oihw:  (Cout, Cin, K, K) f32 weights; `mask` per output channel.
    Returns: conv_out (N, Ho*Wo, Cp_out) bf16, mean (Cp_out,), var (Cp_out,),
             and (Ho, Wo).
    Note: conv bias is intentionally dropped - it cancels in training-mode BN.
    """
    n, h, w, ca = x.shape
    cout, cin, k, _ = w_oihw.shape
    assert ca >= cin
    cp_out = _round_up(cout, _LANE)

    x_ph, (ho, wo, hq, kp) = _fold_input(x, k, stride, padding)
    w_fold = _fold_weights(w_oihw, mask, ca, kp, cp_out)
    rows_total = x_ph.shape[1]

    # Output-channel tiling keeps the f32 accumulator <= ~half the vreg file.
    tn = cp_out if cp_out <= 256 else 256
    n_ct = cp_out // tn
    acc_budget = 128 * 1024                                   # f32 bytes
    max_mt = max(wo, acc_budget // (4 * tn))
    th = _pick_divisor(ho, max(1, min(row_tile_target, max_mt) // wo))
    mt = th * wo
    n_rt = ho // th

    # Static row-tap schedule: flat-row base per kernel-height tap.
    s = stride
    tap_bases = [(kh, ((kh % s) * hq + kh // s) * wo) for kh in range(k)]

    def kernel(x_ref, w_ref, o_ref, st_ref):
        row0 = pl.multiple_of(pl.program_id(1) * mt, mt)
        acc = None
        for kh, base in tap_bases:                    # static unroll (<= K)
            xs = x_ref[0, pl.ds(base + row0, mt), :]  # contiguous (mt, Kp) slab
            part = jnp.dot(xs, w_ref[kh], preferred_element_type=jnp.float32)
            acc = part if acc is None else acc + part
        o_ref[0] = acc.astype(o_ref.dtype)            # single lane-dense store
        # BN-stats epilogue from the f32 accumulator, one store of [sum;sumsq].
        st_ref[0] = jnp.concatenate(
            [jnp.sum(acc, axis=0, keepdims=True),
             jnp.sum(acc * acc, axis=0, keepdims=True)], axis=0)

    conv_out, stats = pl.pallas_call(
        kernel,
        out_shape=(
            jax.ShapeDtypeStruct((n, ho * wo, cp_out), jnp.bfloat16),
            jax.ShapeDtypeStruct((n * n_rt, 2, cp_out), jnp.float32),
        ),
        grid=(n, n_rt, n_ct),
        in_specs=[
            # Whole folded image per n; constant over (ti, tj) => DMA'd once.
            pl.BlockSpec((1, rows_total, kp), lambda ni, ti, tj: (ni, 0, 0)),
            # Weights resident across (ni, ti); tiled over output channels.
            pl.BlockSpec((k, kp, tn), lambda ni, ti, tj: (0, 0, tj)),
        ],
        out_specs=(
            pl.BlockSpec((1, mt, tn), lambda ni, ti, tj: (ni, ti, tj)),
            pl.BlockSpec((1, 2, tn), lambda ni, ti, tj: (ni * n_rt + ti, 0, tj)),
        ),
        compiler_params=pltpu.CompilerParams(
            # batch is the megacore-sharded axis; the resident-activation axes
            # stay "arbitrary" so both cores don't each DMA the full image.
            dimension_semantics=("parallel", "arbitrary", "arbitrary"),
            vmem_limit_bytes=_vmem_limit_bytes()),
    )(x_ph, w_fold)

    # Tiny cross-tile reduction of partial stats in plain JAX.
    # TODO(synk): a compensated / Welford-style combine would be safer for very
    # large N*Ho*Wo; fine at these magnitudes.
    m = float(n * ho * wo)
    totals = jnp.sum(stats, axis=0)                     # (2, Cp_out)
    mean = totals[0] / m
    var = jnp.maximum(totals[1] / m - mean * mean, 0.0)  # biased (training BN)
    return conv_out, mean, var, (ho, wo)


# ----------------- fused BN-apply (+residual +ReLU) Pallas kernel ------------

def _make_bn_apply_kernel(apply_relu, has_res):
    def kernel(y_ref, sc_ref, sh_ref, *rest):
        if has_res:
            r_ref, o_ref = rest
        else:
            (o_ref,) = rest
        out = y_ref[...].astype(jnp.float32) * sc_ref[...] + sh_ref[...]
        if has_res:
            out = out + r_ref[...].astype(jnp.float32)
        if apply_relu:
            out = jnp.maximum(out, 0.0)
        o_ref[...] = out.astype(o_ref.dtype)
    return kernel


def batchnorm_apply(y_flat, mean, var, gamma, beta, *, relu, residual=None,
                    tile_target=1024):
    """Tiled (y*scale + shift) (+residual) (+ReLU); bf16 in, bf16 out."""
    m, cp = y_flat.shape
    gamma_p = _pad_channels(gamma.astype(jnp.float32), cp)
    beta_p = _pad_channels(beta.astype(jnp.float32), cp)
    scale = gamma_p * jax.lax.rsqrt(var + _EPS)
    shift = beta_p - mean * scale
    scale = scale.reshape(1, cp)
    shift = shift.reshape(1, cp)

    tm = _pick_tile_rows(m, tile_target)
    args = [y_flat, scale, shift]
    in_specs = [pl.BlockSpec((tm, cp), lambda i: (i, 0)),
                pl.BlockSpec((1, cp), lambda i: (0, 0)),
                pl.BlockSpec((1, cp), lambda i: (0, 0))]
    if residual is not None:
        args.append(residual)
        in_specs.append(pl.BlockSpec((tm, cp), lambda i: (i, 0)))

    return pl.pallas_call(
        _make_bn_apply_kernel(relu, residual is not None),
        out_shape=jax.ShapeDtypeStruct((m, cp), jnp.bfloat16),
        grid=(m // tm,),
        in_specs=in_specs,
        out_specs=pl.BlockSpec((tm, cp), lambda i: (i, 0)),
        compiler_params=pltpu.CompilerParams(
            dimension_semantics=("parallel",),
            vmem_limit_bytes=_vmem_limit_bytes()),
    )(*args)


# --------------------------- SSBasicBlock forward ----------------------------

def ss_basic_block_forward(x, params, *, stride, keep_ratio=1.0,
                           row_tile_target=256, bn_tile_target=1024):
    """NHWC bf16 input (real channels leading) -> NHWC bf16, channel-padded."""
    n, h, w, _ = x.shape
    cout = params["conv1_w"].shape[0]
    cp_out = _round_up(cout, _LANE)
    mask = create_neuron_mask(cout, keep_ratio)

    y1, m1, v1, (ho, wo) = masked_conv2d_bn_stats(
        x, params["conv1_w"], mask, stride=stride, padding=1,
        row_tile_target=row_tile_target)
    h1 = batchnorm_apply(y1.reshape(n * ho * wo, cp_out), m1, v1,
                         params["bn1_g"], params["bn1_b"], relu=True,
                         tile_target=bn_tile_target)
    h1_img = h1.reshape(n, ho, wo, cp_out)        # free metadata reshape

    y2, m2, v2, _ = masked_conv2d_bn_stats(
        h1_img, params["conv2_w"], mask, stride=1, padding=1,
        row_tile_target=row_tile_target)

    if params.get("down_w") is not None:          # 1x1 strided downsample branch
        yd, md, vd, _ = masked_conv2d_bn_stats(
            x, params["down_w"], mask, stride=stride, padding=0,
            row_tile_target=row_tile_target)
        res = batchnorm_apply(yd.reshape(n * ho * wo, cp_out), md, vd,
                              params["down_bn_g"], params["down_bn_b"],
                              relu=False, tile_target=bn_tile_target)
    else:                                         # identity residual
        res = _pad_channels(x.astype(jnp.bfloat16), cp_out)
        res = res.reshape(n * ho * wo, cp_out)

    out = batchnorm_apply(y2.reshape(n * ho * wo, cp_out), m2, v2,
                          params["bn2_g"], params["bn2_b"], relu=True,
                          residual=res, tile_target=bn_tile_target)
    return out.reshape(n, ho, wo, cp_out)


def ss_basic_block_forward_nchw(x_nchw, params, *, stride, keep_ratio=1.0,
                                row_tile_target=256, bn_tile_target=1024):
    """Thin NCHW entry/exit wrapper (in a full ResNet this is hoisted once)."""
    cout = params["conv1_w"].shape[0]
    x = jnp.transpose(x_nchw, (0, 2, 3, 1)).astype(jnp.bfloat16)  # NCHW -> NHWC
    out = ss_basic_block_forward(x, params, stride=stride,
                                 keep_ratio=keep_ratio,
                                 row_tile_target=row_tile_target,
                                 bn_tile_target=bn_tile_target)
    return jnp.transpose(out[..., :cout], (0, 3, 1, 2)).astype(jnp.float32)


# ------------------------ plain-JAX reference (check) ------------------------

def _q(x):
    return x.astype(jnp.bfloat16).astype(jnp.float32)


def _ref_forward(x_nchw, params, *, stride, keep_ratio):
    """Faithful f32 reference of the PyTorch forward (training-mode BN).

    Only the conv MXU operands are mirrored in bf16 (the kernel genuinely uses
    bf16 operands); all activations stay f32 here, so the comparison tolerance
    must absorb the kernel pipeline's bf16 activation quantization.
    """
    x = _q(jnp.transpose(x_nchw, (0, 2, 3, 1)))
    cout = params["conv1_w"].shape[0]
    mask = create_neuron_mask(cout, keep_ratio)

    def conv(xi, wgt, b, s, p):
        wm = _q(wgt * mask[:, None, None, None])
        y = jax.lax.conv_general_dilated(
            _q(xi), jnp.transpose(wm, (2, 3, 1, 0)),
            window_strides=(s, s), padding=[(p, p), (p, p)],
            dimension_numbers=("NHWC", "HWIO", "NHWC"),
            precision=jax.lax.Precision.HIGHEST)
        return y + b * mask          # bias kept here; it cancels in training BN

    def bn(y, g, b):
        mean = jnp.mean(y, axis=(0, 1, 2), keepdims=True)
        var = jnp.mean((y - mean) ** 2, axis=(0, 1, 2), keepdims=True)
        return (y - mean) * jax.lax.rsqrt(var + _EPS) * g + b

    out = jax.nn.relu(bn(conv(x, params["conv1_w"], params["conv1_b"], stride, 1),
                         params["bn1_g"], params["bn1_b"]))
    out = bn(conv(out, params["conv2_w"], params["conv2_b"], 1, 1),
             params["bn2_g"], params["bn2_b"])
    if params.get("down_w") is not None:
        res = bn(conv(x, params["down_w"], params["down_b"], stride, 0),
                 params["down_bn_g"], params["down_bn_b"])
    else:
        res = x
    return jnp.transpose(jax.nn.relu(out + res), (0, 3, 1, 2))


# ----------------------------------- main -----------------------------------

if __name__ == "__main__":
    def run_case(cin, cout, stride, keep_ratio, with_down, key, **tile_kw):
        ks = jax.random.split(key, 13)

        def nrm(kk, shape, s=0.1):
            return s * jax.random.normal(kk, shape, jnp.float32)

        params = {
            "conv1_w": nrm(ks[0], (cout, cin, 3, 3)), "conv1_b": nrm(ks[1], (cout,)),
            "bn1_g": 1.0 + nrm(ks[2], (cout,)), "bn1_b": nrm(ks[3], (cout,)),
            "conv2_w": nrm(ks[4], (cout, cout, 3, 3)), "conv2_b": nrm(ks[5], (cout,)),
            "bn2_g": 1.0 + nrm(ks[6], (cout,)), "bn2_b": nrm(ks[7], (cout,)),
        }
        if with_down:
            params.update({
                "down_w": nrm(ks[8], (cout, cin, 1, 1)), "down_b": nrm(ks[9], (cout,)),
                "down_bn_g": 1.0 + nrm(ks[10], (cout,)),
                "down_bn_b": nrm(ks[11], (cout,)),
            })
        else:
            params["down_w"] = None

        x = jax.random.normal(ks[12], (2, cin, 16, 16), jnp.float32)
        out = jax.block_until_ready(
            ss_basic_block_forward_nchw(x, params, stride=stride,
                                        keep_ratio=keep_ratio, **tile_kw))
        ref = _ref_forward(x, params, stride=stride, keep_ratio=keep_ratio)
        assert out.shape == (2, cout, 16 // stride, 16 // stride), out.shape
        err = float(jnp.max(jnp.abs(out - ref)))
        # Tolerance covers the bf16 activation pipeline (bf16 conv out / BN-apply
        # out / residual) vs. the f32 reference, plus the dropped conv bias whose
        # effect cancels exactly in training-mode BN but shifts bf16 rounding.
        assert jnp.allclose(out, ref, rtol=5e-2, atol=5e-2), err

    key = jax.random.PRNGKey(0)
    # 1) downsample path (stride=2, Cin != Cout), pruning mask active.
    run_case(cin=4, cout=8, stride=2, keep_ratio=0.75, with_down=True,
             key=jax.random.fold_in(key, 0))
    # 2) identity-residual path (stride=1, Cin == Cout); small tile targets to
    #    exercise multi-tile grids / index maps.
    run_case(cin=8, cout=8, stride=1, keep_ratio=1.0, with_down=False,
             key=jax.random.fold_in(key, 1),
             row_tile_target=32, bn_tile_target=64)

    print("KERNEL_OK")
</pallas_src>

<mosaic_0001>
module attributes {stable_mosaic.version = 11 : i64} {
  func.func @kernel(%arg0: i32, %arg1: i32, %arg2: i32, %arg3: memref<1x144x128xbf16, #tpu.memory_space<vmem>>, %arg4: memref<3x128x128xbf16, #tpu.memory_space<vmem>>, %arg5: memref<1x64x128xbf16, #tpu.memory_space<vmem>>, %arg6: memref<1x2x128xf32, #tpu.memory_space<vmem>>) attributes {dimension_semantics = [#tpu.dimension_semantics<parallel>, #tpu.dimension_semantics<arbitrary>, #tpu.dimension_semantics<arbitrary>], iteration_bounds = array<i64: 2, 1, 1>, scalar_prefetch = 0 : i64, scratch_operands = 0 : i64, tpu.core_type = #tpu.core_type<tc>, window_params = [{transform_indices = @transform_0, window_bounds = array<i64: 1, 144, 128>}, {transform_indices = @transform_1, window_bounds = array<i64: 3, 128, 128>}, {transform_indices = @transform_2, window_bounds = array<i64: 1, 64, 128>}, {transform_indices = @transform_3, window_bounds = array<i64: 1, 2, 128>}]} {
    %c64_i32 = arith.constant 64 : i32
    %0 = arith.muli %arg1, %c64_i32 : i32
    %1 = tpu.assume_multiple %0, 64 : i32
    %c0_i32 = arith.constant 0 : i32
    %2 = arith.addi %c0_i32, %1 : i32
    %c0 = arith.constant 0 : index
    %3 = arith.index_cast %2 : i32 to index
    %c0_0 = arith.constant 0 : index
    %4 = vector.load %arg3[%c0, %3, %c0_0] : memref<1x144x128xbf16, #tpu.memory_space<vmem>>, vector<1x64x128xbf16>
    %5 = vector.shape_cast %4 : vector<1x64x128xbf16> to vector<64x128xbf16>
    %c0_1 = arith.constant 0 : index
    %c0_2 = arith.constant 0 : index
    %c0_3 = arith.constant 0 : index
    %6 = vector.load %arg4[%c0_1, %c0_2, %c0_3] : memref<3x128x128xbf16, #tpu.memory_space<vmem>>, vector<1x128x128xbf16>
    %7 = vector.shape_cast %6 : vector<1x128x128xbf16> to vector<128x128xbf16>
    %cst = arith.constant dense<0.000000e+00> : vector<64x128xf32>
    %8 = tpu.matmul %5, %7, %cst {dimension_numbers = #tpu.dot_dimension_numbers<[1], [0], [0], [1], [0, 0, 1, 1], [], []>} : vector<64x128xbf16>, vector<128x128xbf16>, vector<64x128xf32> -> vector<64x128xf32>
    %c72_i32 = arith.constant 72 : i32
    %9 = arith.addi %c72_i32, %1 : i32
    %c0_4 = arith.constant 0 : index
    %10 = arith.index_cast %9 : i32 to index
    %c0_5 = arith.constant 0 : index
    %11 = vector.load %arg3[%c0_4, %10, %c0_5] : memref<1x144x128xbf16, #tpu.memory_space<vmem>>, vector<1x64x128xbf16>
    %12 = vector.shape_cast %11 : vector<1x64x128xbf16> to vector<64x128xbf16>
    %c1 = arith.constant 1 : index
    %c0_6 = arith.constant 0 : index
    %c0_7 = arith.constant 0 : index
    %13 = vector.load %arg4[%c1, %c0_6, %c0_7] : memref<3x128x128xbf16, #tpu.memory_space<vmem>>, vector<1x128x128xbf16>
    %14 = vector.shape_cast %13 : vector<1x128x128xbf16> to vector<128x128xbf16>
    %cst_8 = arith.constant dense<0.000000e+00> : vector<64x128xf32>
    %15 = tpu.matmul %12, %14, %cst_8 {dimension_numbers = #tpu.dot_dimension_numbers<[1], [0], [0], [1], [0, 0, 1, 1], [], []>} : vector<64x128xbf16>, vector<128x128xbf16>, vector<64x128xf32> -> vector<64x128xf32>
    %16 = arith.addf %8, %15 : vector<64x128xf32>
    %c8_i32 = arith.constant 8 : i32
    %17 = arith.addi %c8_i32, %1 : i32
    %c0_9 = arith.constant 0 : index
    %18 = arith.index_cast %17 : i32 to index
    %c0_10 = arith.constant 0 : index
    %19 = vector.load %arg3[%c0_9, %18, %c0_10] : memref<1x144x128xbf16, #tpu.memory_space<vmem>>, vector<1x64x128xbf16>
    %20 = vector.shape_cast %19 : vector<1x64x128xbf16> to vector<64x128xbf16>
    %c2 = arith.constant 2 : index
    %c0_11 = arith.constant 0 : index
    %c0_12 = arith.constant 0 : index
    %21 = vector.load %arg4[%c2, %c0_11, %c0_12] : memref<3x128x128xbf16, #tpu.memory_space<vmem>>, vector<1x128x128xbf16>
    %22 = vector.shape_cast %21 : vector<1x128x128xbf16> to vector<128x128xbf16>
    %cst_13 = arith.constant dense<0.000000e+00> : vector<64x128xf32>
    %23 = tpu.matmul %20, %22, %cst_13 {dimension_numbers = #tpu.dot_dimension_numbers<[1], [0], [0], [1], [0, 0, 1, 1], [], []>} : vector<64x128xbf16>, vector<128x128xbf16>, vector<64x128xf32> -> vector<64x128xf32>
    %24 = arith.addf %16, %23 : vector<64x128xf32>
    %25 = arith.truncf %24 : vector<64x128xf32> to vector<64x128xbf16>
    %c0_14 = arith.constant 0 : index
    %c0_15 = arith.constant 0 : index
    %c0_16 = arith.constant 0 : index
    %26 = vector.load %arg5[%c0_14, %c0_15, %c0_16] : memref<1x64x128xbf16, #tpu.memory_space<vmem>>, vector<1x64x128xbf16>
    %27 = vector.shape_cast %26 : vector<1x64x128xbf16> to vector<64x128xbf16>
    %28 = vector.shape_cast %25 : vector<64x128xbf16> to vector<1x64x128xbf16>
    tpu.vector_store %arg5[%c0_14, %c0_15, %c0_16], %28 {strides = array<i32>} : memref<1x64x128xbf16, #tpu.memory_space<vmem>>, vector<1x64x128xbf16>,
    %cst_17 = arith.constant dense<0.000000e+00> : vector<128xf32>
    %29 = vector.multi_reduction <add>, %24, %cst_17 [0] : vector<64x128xf32> to vector<128xf32>
    %30 = vector.shape_cast %29 : vector<128xf32> to vector<1x128xf32>
    %31 = arith.mulf %24, %24 : vector<64x128xf32>
    %cst_18 = arith.constant dense<0.000000e+00> : vector<128xf32>
    %32 = vector.multi_reduction <add>, %31, %cst_18 [0] : vector<64x128xf32> to vector<128xf32>
    %33 = vector.shape_cast %32 : vector<128xf32> to vector<1x128xf32>
    %34 = tpu.concatenate %30, %33 in 0 : vector<1x128xf32>, vector<1x128xf32> -> vector<2x128xf32>
    %c0_19 = arith.constant 0 : index
    %c0_20 = arith.constant 0 : index
    %c0_21 = arith.constant 0 : index
    %35 = vector.load %arg6[%c0_19, %c0_20, %c0_21] : memref<1x2x128xf32, #tpu.memory_space<vmem>>, vector<1x2x128xf32>
    %36 = vector.shape_cast %35 : vector<1x2x128xf32> to vector<2x128xf32>
    %37 = vector.shape_cast %34 : vector<2x128xf32> to vector<1x2x128xf32>
    tpu.vector_store %arg6[%c0_19, %c0_20, %c0_21], %37 {strides = array<i32>} : memref<1x2x128xf32, #tpu.memory_space<vmem>>, vector<1x2x128xf32>,
    return
  }
  func.func @transform_0(%arg0: i32, %arg1: i32, %arg2: i32) -> (i32, i32, i32) {
    %c0_i32 = arith.constant 0 : i32
    %c0_i32_0 = arith.constant 0 : i32
    %c0_i32_1 = arith.constant 0 : i32
    return %arg0, %c0_i32, %c0_i32_0 : i32, i32, i32
  }
  func.func @transform_1(%arg0: i32, %arg1: i32, %arg2: i32) -> (i32, i32, i32) {
    %c0_i32 = arith.constant 0 : i32
    %c0_i32_0 = arith.constant 0 : i32
    %c0_i32_1 = arith.constant 0 : i32
    return %c0_i32, %c0_i32_0, %arg2 : i32, i32, i32
  }
  func.func @transform_2(%arg0: i32, %arg1: i32, %arg2: i32) -> (i32, i32, i32) {
    %c0_i32 = arith.constant 0 : i32
    return %arg0, %arg1, %arg2 : i32, i32, i32
  }
  func.func @transform_3(%arg0: i32, %arg1: i32, %arg2: i32) -> (i32, i32, i32) {
    %c1_i32 = arith.constant 1 : i32
    %0 = arith.muli %arg0, %c1_i32 : i32
    %1 = arith.addi %0, %arg1 : i32
    %c0_i32 = arith.constant 0 : i32
    %c0_i32_0 = arith.constant 0 : i32
    return %1, %c0_i32, %arg2 : i32, i32, i32
  }
}

</mosaic_0001>

<bundles_post_ra>
// kernel: tpu_custom_call.1
= control target key start
LH: loop header
LB: loop body
LE: loop exit
PB: predicated region body
PF: predicated region fallthrough
CT: control target
= control target key end

     0   :  { %9 = vsyncpa [#allocation3], 0  ;;  %s1792_s0 = inlined_call_operand.hbm [shape: bf16[2,144,128], index: 0, kind: input, shape index: {}]   ;;  %s1793_s1 = inlined_call_operand.hbm [shape: bf16[3,128,128], index: 1, kind: input, shape index: {}]   ;;  %s1794_s2 = inlined_call_operand.hbm [shape: bf16[2,64,128], index: 2, kind: output, shape index: {0}]   ;;  %s1795_s3 = inlined_call_operand.hbm [shape: f32[2,2,128], index: 3, kind: output, shape index: {1}]  }
   0x1   :  { %11 = vsyncpa [#allocation3 + $0x1], 0 }
   0x2   :  { %12 = vsyncpa [#allocation6], 0 }
   0x3   :  { %13 = vsyncpa [#allocation4], 0 }
   0x4   :  { %15 = vsyncpa [#allocation4 + $0x1], 0 }
   0x5   :  { %16 = vsyncpa [#allocation9], 0 }
   0x6   :  { %18 = vsyncpa [#allocation9 + $0x1], 0  ;;  %s1566_s12 = smov 0   ;;  %s1568_s13 = smov 0  }
   0x7   :  { %s1570_s14 = smov 0   ;;  %s1572_s15 = smov 0  }
   0x8   :  { %s1574_s16 = smov 0   ;;  %s1576_s17 = smov 0  }
   0x9 LB: > { %s1014_s18 = sadd.s32 4294967295, %s1536_s17   ;;  %s1015_s19 = sadd.s32 4294967294, %s1536_s17   ;;  %s1536_s17 = sphi %s1576_s17, %s24_s17   ;;  %s1532_s16 = sphi %s1574_s16, %s1811_s16   ;;  %s1528_s15 = sphi %s1572_s15, %s1810_s15   ;;  %s1524_s14 = sphi %s1570_s14, %s1809_s14   ;;  %s1520_s13 = sphi %s1568_s13, %s1808_s13   ;;  %s1516_s12 = sphi %s1566_s12, %s1807_s12  }
   0xa   : > { %p63_p0 = scmp.ne.s32.totalorder %s1520_s13, %s1516_s12  ;;  %p1600_p1 = scmp.eq.s32.totalorder %s1014_s18, 0 }
   0xb   : > { %p1604_p2 = scmp.eq.s32.totalorder %s1014_s18, 1  ;;  %p123_p3 = scmp.eq.s32.totalorder %s1015_s19, 1 }
   0xc   : > { %p1610_p4 = por %p1600_p1, %p63_p0  ;;  %p1016_p5 = scmp.ge.s32.totalorder %s1536_s17, 1 }
   0xd   : > { %p1615_p6 = por %p123_p3, %p63_p0  ;;  %p160_p7 = scmp.lt.s32.totalorder %s1536_s17, 3 }
   0xe   : > { %s1799_s22 = scalar_select %p1610_p4, 1, 0 }
   0xf   : > { %s1800_s23 = scalar_select %p1615_p6, 1, 0 }
  0x10   : > { %p1620_p8 = pnand %p1016_p5, %p160_p7  ;;  %s1538_s25 = smov [#allocation5]  }
  0x11   : > { %s174_s26 = sshll.u32 %s1538_s25, 4  ;;  %p1018_p10 = scmp.ge.s32.totalorder %s1536_s17, 2  ;;  %s175_s26 = int_to_ptr.vmem [resolvable:$true] %s174_s26 }
  0x12   : > { %p1260_p9 = pneg %p1620_p8  ;;  %s43_s28 = sadd.s32 1, %s1532_s16 }
  0x13   : > { %s1379_s29 = scalar_lea.vmem %s175_s26, 3072  ;;  %p1387_p5 = scmp.lt.s32.totalorder %s175_s26, %s175_s26 }
  0x14   : > { %p1629_p11 = pnand %p1260_p9, %p1600_p1  ;;  %p1380_p13 = scmp.ne.s32.totalorder %s175_s26, %s1379_s29 }
  0x15   : > { %p1388_p7 = scmp.lt.s32.totalorder %s1379_s29, %s1379_s29 }
  0x16   : > { %p1370_p12 = pneg %p1629_p11 }
  0x17   : > { %p1389_p6 = por %p1388_p7, %p1387_p5 }
  0x18   : > { %p1382_p0 = pnand %p1380_p13, %p1370_p12 }
  0x1a   : > { %p1383_p3 = pneg %p1382_p0 }
  0x1c   : > { %p1390_p4 = pnand %p1389_p6, %p1383_p3 }
  0x1e   : > { %1393 = shalt.err (!%p1390_p4)
}
  0x1f   : > { %s1539_s30 = smov 64   ;;  %s1540_s4 = smov 4  }
  0x20   : > { %1263 = dma.hbm_to_vmem [thread:$0]  (!%p1629_p11), %s1793_s1, 3072, %s175_s26, [#allocation6], %s1539_s30, %s1539_s30, %s1540_s4  }
  0x21   : > { %p45_p4 = scmp.ge.s32.totalorder %s43_s28, 2  ;;  %s50_s7 = sadd.s32 1, %s1524_s14 }
  0x22   : > { %p57_p6 = scmp.ne.s32.totalorder %s1524_s14, %s1520_s13  ;;  %p58_p9 = scmp.eq.s32.totalorder %s1536_s17, 0 }
  0x23   : > { %s1813_s28 = smov (%p45_p4, %s43_s28), 0  ;;  %p1276_p0 = scmp.lt.s32.totalorder %s1536_s17, 2 }
  0x24   : > { %p59_p12 = por %p58_p9, %p57_p6  ;;  %p1652_p13 = por %p1604_p2, %p57_p6 }
  0x25   : > { %s47_s9 = ssub.s32 %s1532_s16, %s1813_s28  ;;  %s188_s10 = sand.u32 1, %s1524_s14  }
  0x26   : > { %p48_p3 = scmp.eq.s32.totalorder %s47_s9, 0  ;;  %s1247_s11 = smul.u32 72, %s188_s10 }
  0x27   : > { %s1248_s19 = smul.u32 1152, %s1532_s16  ;;  %p1664_p11 = pnand %p1276_p0, %p59_p12 }
  0x28   : > { %s1661_s18 = scalar_select %p48_p3, %s1524_s14, %s50_s7  }
  0x29   : > { %s192_s25 = scalar_lea.vmem [#allocation2], %s1247_s11  ;;  %s198_s5 = scalar_lea.hbm %s1792_s0, %s1248_s19 }
  0x2a   : > { %s199_s26 = sshll.u32 %s192_s25, 4  ;;  %s189_s6 = scalar_lea.sflag [#allocation3], %s188_s10  ;;  %s200_s26 = int_to_ptr.vmem [resolvable:$true] %s199_s26 }
  0x2b   : > { %p1396_p2 = pneg %p1664_p11  ;;  %s1407_s9 = scalar_lea.vmem %s200_s26, 1152 }
  0x2c   : > { %p1408_p5 = scmp.ne.s32.totalorder %s200_s26, %s1407_s9  ;;  %s1541_s7 = smov [#allocation2]  }
  0x2d   : > { %s1412_s11 = sshll.u32 %s1541_s7, 4  ;;  %s1413_s11 = int_to_ptr.vmem [resolvable:$false] %s1412_s11 }
  0x2e   : > { %p1410_p7 = pnand %p1408_p5, %p1396_p2  ;;  %s1414_s25 = scalar_lea.vmem %s1413_s11, 2304 }
  0x2f   : > { %p1415_p6 = scmp.lt.s32.totalorder %s200_s26, %s1413_s11  ;;  %p1416_p9 = scmp.lt.s32.totalorder %s1414_s25, %s1407_s9 }
  0x30   : > { %p1411_p4 = pneg %p1410_p7 }
  0x31   : > { %p1417_p12 = por %p1416_p9, %p1415_p6 }
  0x33   : > { %p1418_p0 = pnand %p1417_p12, %p1411_p4 }
  0x35   : > { %1421 = shalt.err (!%p1418_p0)
}
  0x36   : > { %1267 = dma.hbm_to_vmem [thread:$0]  (!%p1664_p11), %s198_s5, 1152, %s200_s26, %s189_s6, %s1539_s30, %s1539_s30, %s1540_s4  }
  0x37   : > { %211 = sbr.rel (%p1620_p8) target bundleno = 381 (0x17d), region = 28  ;;  %s1681_s10 = sand.u32 (!%p1620_p8), 1, %s1520_s13  }
  0x38   : > { %s1249_s19 = smul.u32 (!%p1620_p8), 72, %s1681_s10  ;;  %s214_s29 = scalar_lea.sflag (!%p1620_p8), [#allocation3], %s1681_s10 }
  0x39   : > { %p1805_p3 = scmp.ne.s32.totalorder (!%p1620_p8), %s1799_s22, 0 }
  0x3a   : > { %s1685_s21 = scalar_lea.vmem (!%p1620_p8), [#allocation2], %s1249_s19 }
  0x3c   : > { %1499 = dma.done.wait (%p1805_p3), %s214_s29, 1152  }
  0x3d   : > { %1501 = vsyncadd (%p1805_p3), %s214_s29, 4294966144 }
  0x3e   : > { %1503 = dma.done.wait (%p1600_p1), [#allocation6], 3072  }
  0x3f   : > { %1505 = vsyncadd (%p1600_p1), [#allocation6], 4294964224  ;;  %v1332_v0 = vld [vmem:[#allocation5 + $0x78] sm:$0xff]   ;;  %v1334_v2 = vld [vmem:[#allocation5 + $0x70] sm:$0xff]   ;;  %s1022_s20 = sshll.u32 %s1681_s10, 5  ;;  %s1099_s30 = sshll.u32 %s1528_s15, 9 }
  0x40   : > { %v1333_v1 = vld [vmem:[#allocation5 + $0x38] sm:$0xff]   ;;  %1159 = vmatprep.subr.bf16.mxu0 %v1332_v0  ;;  %v1335_v3 = vld [vmem:[#allocation5 + $0x30] sm:$0xff]   ;;  %v1336_v4 = vld [vmem:[#allocation5 + $0x68] sm:$0xff]   ;;  %s241_s22 = scalar_lea.vmem [#allocation7], %s1022_s20  ;;  %s1717_s27 = scalar_lea.hbm %s1794_s2, %s1099_s30 }
  0x41   : > { %1183 = vmatprep.subr.bf16.mxu1 %v1333_v1  ;;  %1160 = vmatpush3.bf16.msra.mxu0 %v1332_v0  ;;  %v1337_v5 = vld [vmem:[#allocation5 + $0x28] sm:$0xff]   ;;  %v1338_v6 = vld [vmem:[#allocation5 + $0x60] sm:$0xff]   ;;  %v1340_v8 = vld [vmem:[#allocation5 + $0x58] sm:$0xff]   ;;  %s859_s24 = sshll.u32 %s241_s22, 4  ;;  %s838_s5 = scalar_lea.sflag [#allocation4], %s1681_s10  ;;  %s1711_s24 = int_to_ptr.vmem [resolvable:$true] %s859_s24 }
  0x42   : > { %1184 = vmatpush3.bf16.msra.mxu1 %v1333_v1  ;;  %1161 = vmatprep.subr.bf16.mxu0 %v1334_v2  ;;  %v1339_v7 = vld [vmem:[#allocation5 + $0x20] sm:$0xff]   ;;  %v1341_v9 = vld [vmem:[#allocation5 + $0x18] sm:$0xff]   ;;  %v1342_v10 = vld [vmem:[#allocation5 + $0x50] sm:$0xff]   ;;  %s1422_s6 = scalar_lea.vmem %s1711_s24, 512  ;;  %s1542_s9 = smov [#allocation7]  }
  0x43   : > { %1185 = vmatprep.subr.bf16.mxu1 %v1335_v3  ;;  %v1343_v11 = vld [vmem:[#allocation5 + $0x10] sm:$0xff]   ;;  %v1344_v14 = vld [vmem:[#allocation5 + $0x48] sm:$0xff]   ;;  %v1346_v16 = vld [vmem:[#allocation5 + $0x40] sm:$0xff]   ;;  %p1423_p1 = scmp.ne.s32.totalorder %s1711_s24, %s1422_s6  ;;  %s1426_s7 = sshll.u32 %s1542_s9, 4  ;;  %s1427_s7 = int_to_ptr.vmem [resolvable:$false] %s1426_s7 }
  0x44   : > { %v1348_v12 = vld [vmem:[%s1685_s21 + $0x24] sm:$0xff]   ;;  %v1345_v15 = vld [vmem:[#allocation5 + $0x8] sm:$0xff]   ;;  %s1428_s11 = scalar_lea.vmem %s1427_s7, 1024  ;;  %p1429_p2 = scmp.lt.s32.totalorder %s1711_s24, %s1427_s7 }
  0x45   : > { %1162 = vmatpush3.bf16.msra.mxu0 %v1334_v2  ;;  %v1349_v13 = vld [vmem:[%s1685_s21] sm:$0xff]   ;;  %1175 = vmatprep.mubr.bf16.mxu0 %v1348_v12  ;;  %v1347_v17 = vld [vmem:[#allocation5] sm:$0xff]   ;;  %v1354_v24 = vld [vmem:[#allocation5 + $0xa8] sm:$0xff]   ;;  %p1424_p8 = pnand %p1423_p1, %p1652_p13  ;;  %p1430_p5 = scmp.lt.s32.totalorder %s1428_s11, %s1422_s6 }
  0x46   : > { %1186 = vmatpush3.bf16.msra.mxu1 %v1335_v3  ;;  %1163 = vmatprep.subr.bf16.mxu0 %v1336_v4  ;;  %v1352_v18 = vld [vmem:[#allocation5 + $0xb8] sm:$0xff]   ;;  %v1353_v21 = vld [vmem:[#allocation5 + $0xb0] sm:$0xff]   ;;  %v1358_v23 = vld [vmem:[%s1685_s21 + $0x10] sm:$0xff]  }
  0x47   : > { %1187 = vmatprep.subr.bf16.mxu1 %v1337_v5  ;;  %1199 = vmatprep.mubr.bf16.mxu1 %v1349_v13  ;;  %v1350_v19 = vld [vmem:[%s1685_s21 + $0x2c] sm:$0xff]   ;;  %v1357_v22 = vld [vmem:[%s1685_s21 + $0x34] sm:$0xff]   ;;  %v1359_v25 = vld [vmem:[%s1685_s21 + $0x3c] sm:$0xff]   ;;  %p1425_p11 = pneg %p1424_p8  ;;  %p1431_p7 = por %p1430_p5, %p1429_p2 }
  0x48   : > { %v1351_v20 = vld [vmem:[%s1685_s21 + $0x8] sm:$0xff]   ;;  %v1360_v26 = vld [vmem:[%s1685_s21 + $0x18] sm:$0xff]  }
  0x49   : > { %1164 = vmatpush3.bf16.msra.mxu0 %v1336_v4  ;;  %v1355_v27 = vld [vmem:[#allocation5 + $0xa0] sm:$0xff]   ;;  %v1356_v30 = vld [vmem:[#allocation5 + $0x98] sm:$0xff]   ;;  %v1361_v31 = vld [vmem:[#allocation5 + $0x90] sm:$0xff]   ;;  %p1432_p4 = pnand %p1431_p7, %p1425_p11 }
  0x4a   : > { %1188 = vmatpush3.bf16.msra.mxu1 %v1337_v5  ;;  %1165 = vmatprep.subr.bf16.mxu0 %v1338_v6  ;;  %v1364_v28 = vld [vmem:[%s1685_s21 + $0x4] sm:$0xff]   ;;  %v1365_v29 = vld [vmem:[%s1685_s21 + $0x14] sm:$0xff]   ;;  %v1366_v34 = vld [vmem:[%s1685_s21 + $0xc] sm:$0xff]  }
  0x4b   : > { %1189 = vmatprep.subr.bf16.mxu1 %v1339_v7  ;;  %v1362_v32 = vld [vmem:[#allocation5 + $0x88] sm:$0xff]   ;;  %v1363_v33 = vld [vmem:[#allocation5 + $0x80] sm:$0xff]  }
  0x4c   : > { %v1367_v35 = vld [vmem:[%s1685_s21 + $0x1c] sm:$0xff]  }
  0x4d   : > { %1166 = vmatpush3.bf16.msra.mxu0 %v1338_v6 }
  0x4e   : > { %1190 = vmatpush3.bf16.msra.mxu1 %v1339_v7  ;;  %1167 = vmatprep.subr.bf16.mxu0 %v1340_v8 }
  0x4f   : > { %1191 = vmatprep.subr.bf16.mxu1 %v1341_v9 }
  0x51   : > { %1168 = vmatpush3.bf16.msra.mxu0 %v1340_v8 }
  0x52   : > { %1192 = vmatpush3.bf16.msra.mxu1 %v1341_v9  ;;  %1169 = vmatprep.subr.bf16.mxu0 %v1342_v10 }
  0x53   : > { %1193 = vmatprep.subr.bf16.mxu1 %v1343_v11 }
  0x55   : > { %1170 = vmatpush3.bf16.msra.mxu0 %v1342_v10 }
  0x56   : > { %1194 = vmatpush3.bf16.msra.mxu1 %v1343_v11  ;;  %1171 = vmatprep.subr.bf16.mxu0 %v1344_v14 }
  0x57   : > { %1195 = vmatprep.subr.bf16.mxu1 %v1345_v15 }
  0x59   : > { %1172 = vmatpush3.bf16.msra.mxu0 %v1344_v14 }
  0x5a   : > { %1196 = vmatpush3.bf16.msra.mxu1 %v1345_v15  ;;  %1173 = vmatprep.subr.bf16.mxu0 %v1346_v16 }
  0x5b   : > { %1197 = vmatprep.subr.bf16.mxu1 %v1347_v17 }
  0x5d   : > { %1174 = vmatpush3.bf16.msra.mxu0 %v1346_v16 }
  0x5e   : > { %1198 = vmatpush3.bf16.msra.mxu1 %v1347_v17  ;;  %1207 = vmatprep.subr.bf16.mxu0 %v1352_v18 }
  0x5f   : > { %1231 = vmatprep.subr.bf16.mxu1 %v1352_v18 }
  0x60   : > { %1176 = vmatmul.mubr.bf16.vlgmr.msra.gmra.mxu0 %v1350_v19 }
  0x61   : > { %1200 = vmatmul.mubr.bf16.vlgmr.msra.gmra.mxu1 %v1351_v20  ;;  %1208 = vmatpush3.bf16.msra.mxu0 %v1352_v18 }
  0x62   : > { %1239 = vmatpush3.bf16.msra.mxu1 %v1352_v18  ;;  %1209 = vmatprep.subr.bf16.mxu0 %v1353_v21 }
  0x63   : > { %1232 = vmatprep.subr.bf16.mxu1 %v1353_v21  ;;  %1179 = vmatprep.mubr.bf16.mxu0 %v1357_v22 }
  0x64   : > { %1203 = vmatprep.mubr.bf16.mxu1 %v1358_v23 }
  0x65   : > { %1210 = vmatpush3.bf16.msra.mxu0 %v1353_v21 }
  0x66   : > { %1240 = vmatpush3.bf16.msra.mxu1 %v1353_v21  ;;  %1211 = vmatprep.subr.bf16.mxu0 %v1354_v24 }
  0x67   : > { %1233 = vmatprep.subr.bf16.mxu1 %v1354_v24 }
  0x68   : > { %1180 = vmatmul.mubr.bf16.gmra.mxu0 %v1359_v25 }
  0x69   : > { %1212 = vmatpush3.bf16.msra.mxu0 %v1354_v24  ;;  %1204 = vmatmul.mubr.bf16.gmra.mxu1 %v1360_v26 }
  0x6a   : > { %1241 = vmatpush3.bf16.msra.mxu1 %v1354_v24  ;;  %1213 = vmatprep.subr.bf16.mxu0 %v1355_v27 }
  0x6b   : > { %1234 = vmatprep.subr.bf16.mxu1 %v1355_v27  ;;  %1223 = vmatprep.mubr.bf16.mxu0 %v1364_v28 }
  0x6c   : > { %1227 = vmatprep.mubr.bf16.mxu1 %v1365_v29 }
  0x6d   : > { %1214 = vmatpush3.bf16.msra.mxu0 %v1355_v27 }
  0x6e   : > { %1242 = vmatpush3.bf16.msra.mxu1 %v1355_v27  ;;  %1215 = vmatprep.subr.bf16.mxu0 %v1356_v30 }
  0x6f   : > { %1235 = vmatprep.subr.bf16.mxu1 %v1356_v30 }
  0x71   : > { %1216 = vmatpush3.bf16.msra.mxu0 %v1356_v30 }
  0x72   : > { %1243 = vmatpush3.bf16.msra.mxu1 %v1356_v30  ;;  %1217 = vmatprep.subr.bf16.mxu0 %v1361_v31 }
  0x73   : > { %1236 = vmatprep.subr.bf16.mxu1 %v1361_v31 }
  0x75   : > { %1218 = vmatpush3.bf16.msra.mxu0 %v1361_v31 }
  0x76   : > { %1244 = vmatpush3.bf16.msra.mxu1 %v1361_v31  ;;  %1219 = vmatprep.subr.bf16.mxu0 %v1362_v32 }
  0x77   : > { %1237 = vmatprep.subr.bf16.mxu1 %v1362_v32 }
  0x79   : > { %1220 = vmatpush3.bf16.msra.mxu0 %v1362_v32 }
  0x7a   : > { %1245 = vmatpush3.bf16.msra.mxu1 %v1362_v32  ;;  %1221 = vmatprep.subr.bf16.mxu0 %v1363_v33 }
  0x7b   : > { %1238 = vmatprep.subr.bf16.mxu1 %v1363_v33 }
  0x7d   : > { %1222 = vmatpush3.bf16.msra.mxu0 %v1363_v33 }
  0x7e   : > { %1246 = vmatpush3.bf16.msra.mxu1 %v1363_v33 }
  0x80   : > { %1224 = vmatmul.mubr.bf16.vlgmr.msra.gmra.mxu0 %v1366_v34 }
  0x81   : > { %1228 = vmatmul.mubr.bf16.vlgmr.msra.gmra.mxu1 %v1367_v35 }
 0x120   : > { %v1177_v36 = vpop.f32.mrf.mxu0 }
 0x121   : > { %v1201_v37 = vpop.f32.mrf.mxu1 }
 0x122   : > { %v417_v38 = vpop.f32.mrf.mxu0  ;;  %v563_v55 = vadd.f32 %v1201_v37, %v1177_v36 }
 0x123   : > { %v554_v39 = vpop.f32.mrf.mxu1 }
 0x124   : > { %v1178_v40 = vpop.f32.mrf.mxu0  ;;  %v555_v56 = vadd.f32 %v554_v39, %v417_v38 }
 0x125   : > { %v1202_v41 = vpop.f32.mrf.mxu1 }
 0x126   : > { %v420_v42 = vpop.f32.mrf.mxu0  ;;  %v566_v57 = vadd.f32 %v1202_v41, %v1178_v40 }
 0x127   : > { %v557_v43 = vpop.f32.mrf.mxu1 }
 0x128   : > { %v1181_v44 = vpop.f32.mrf.mxu0  ;;  %v558_v62 = vadd.f32 %v557_v43, %v420_v42 }
 0x129   : > { %v1205_v45 = vpop.f32.mrf.mxu1 }
 0x12a   : > { %v433_v46 = vpop.f32.mrf.mxu0  ;;  %v579_v59 = vadd.f32 %v1205_v45, %v1181_v44 }
 0x12b   : > { %v570_v47 = vpop.f32.mrf.mxu1 }
 0x12c   : > { %v1182_v48 = vpop.f32.mrf.mxu0  ;;  %v571_v3 = vadd.f32 %v570_v47, %v433_v46 }
 0x12d   : > { %v1206_v49 = vpop.f32.mrf.mxu1 }
 0x12e   : > { %v436_v50 = vpop.f32.mrf.mxu0  ;;  %v582_v60 = vadd.f32 %v1206_v49, %v1182_v48 }
 0x12f   : > { %v573_v51 = vpop.f32.mrf.mxu1 }
 0x130   : > { %v574_v4 = vadd.f32 %v573_v51, %v436_v50 }
 0x140   : > { %v1225_v52 = vpop.f32.mrf.mxu0 }
 0x141   : > { %v1229_v53 = vpop.f32.mrf.mxu1  ;;  %v754_v63 = vadd.f32 %v1225_v52, %v563_v55 }
 0x142   : > { %v721_v54 = vpop.f32.mrf.mxu0  ;;  %v758_v5 = vadd.f32 %v1229_v53, %v579_v59 }
 0x143   : > { %v737_v58 = vpop.f32.mrf.mxu1  ;;  %v752_v0 = vadd.f32 %v721_v54, %v555_v56  ;;  %v815_v19 = vmul.f32 %v754_v63, %v754_v63 }
 0x144   : > { %v1226_v61 = vpop.f32.mrf.mxu0  ;;  %v756_v11 = vadd.f32 %v737_v58, %v571_v3 }
 0x145   : > { %v755_v1 = vadd.f32 %v1226_v61, %v566_v57  ;;  %v1230_v2 = vpop.f32.mrf.mxu1  ;;  %v813_v14 = vmul.f32 %v752_v0, %v752_v0 }
 0x146   : > { %v1708_v6 = vadd.f32 %v1230_v2, %v582_v60  ;;  %v724_v7 = vpop.f32.mrf.mxu0 }
 0x147   : > { %v1108_v8 = vpack.c.bf16 %v755_v1, %v754_v63  ;;  %v753_v9 = vadd.f32 %v724_v7, %v558_v62  ;;  %v740_v10 = vpop.f32.mrf.mxu1  ;;  %v816_v22 = vmul.f32 %v755_v1, %v755_v1 }
 0x148   : > { %v1118_v12 = vpack.c.bf16 %v1708_v6, %v758_v5  ;;  %v757_v13 = vadd.f32 %v740_v10, %v574_v4 }
 0x149   : > { %1120 = vst [vmem:[%s241_s22 + $0x8] sm:$0xff] %v1108_v8   ;;  %v1103_v15 = vpack.c.bf16 %v753_v9, %v752_v0  ;;  %v800_v16 = vadd.f32 %v753_v9, %v752_v0  ;;  %v814_v17 = vmul.f32 %v753_v9, %v753_v9 }
 0x14a   : > { %1122 = vst [vmem:[%s241_s22 + $0x18] sm:$0xff] %v1118_v12   ;;  %v1113_v18 = vpack.c.bf16 %v757_v13, %v756_v11 }
 0x14b   : > { %1104 = vst [vmem:[%s241_s22] sm:$0xff] %v1103_v15   ;;  %v801_v20 = vadd.f32 %v800_v16, %v754_v63  ;;  %v821_v21 = vadd.f32 %v814_v17, %v813_v14 }
 0x14c   : > { %1121 = vst [vmem:[%s241_s22 + $0x10] sm:$0xff] %v1113_v18  }
 0x14d   : > { %v822_v23 = vadd.f32 %v821_v21, %v815_v19  ;;  %v802_v24 = vadd.f32 %v801_v20, %v755_v1 }
 0x14e   : > { %1435 = shalt.err (!%p1432_p4)
}
 0x14f   : > { %s1436_s25 = scalar_lea.hbm %s1717_s27, 512  ;;  %s1440_s21 = scalar_lea.hbm %s1794_s2, 1024 }
 0x150   : > { %p1437_p6 = scmp.ne.s32.totalorder %s1717_s27, %s1436_s25  ;;  %p1441_p0 = scmp.lt.s32.totalorder %s1717_s27, %s1794_s2 }
 0x151   : > { %p1442_p3 = scmp.lt.s32.totalorder %s1440_s21, %s1436_s25 }
 0x152   : > { %p1438_p9 = pnand %p1437_p6, %p1652_p13 }
 0x153   : > { %p1443_p1 = por %p1442_p3, %p1441_p0 }
 0x154   : > { %p1439_p12 = pneg %p1438_p9 }
 0x156   : > { %p1444_p8 = pnand %p1443_p1, %p1439_p12 }
 0x158   : > { %1447 = shalt.err (!%p1444_p8)
}
 0x159   : > { %s1543_s30 = smov 64   ;;  %s1544_s4 = smov 4   ;;  %v817_v25 = vmul.f32 %v756_v11, %v756_v11  ;;  %v803_v26 = vadd.f32 %v802_v24, %v756_v11  ;;  %v823_v27 = vadd.f32 %v822_v23, %v816_v22  ;;  %v818_v29 = vmul.f32 %v757_v13, %v757_v13 }
 0x15a   : > { %1256 = dma.vmem_to_hbm [thread:$0]  (%p1652_p13), %s1711_s24, 512, %s1717_s27, %s838_s5, %s1543_s30, %s1543_s30, %s1544_s4   ;;  %v819_v31 = vmul.f32 %v758_v5, %v758_v5  ;;  %v820_v34 = vmul.f32 %v1708_v6, %v1708_v6  ;;  %vm834_vm0 = vcmask 1040384  }
 0x15b   : > { %v804_v28 = vadd.f32 %v803_v26, %v757_v13  ;;  %v824_v30 = vadd.f32 %v823_v27, %v817_v25  ;;  %s1023_s24 = sshll.u32 %s1681_s10, 1  ;;  %s1088_s26 = sshll.u32 %s1528_s15, 5 }
 0x15c   : > { %s248_s27 = scalar_lea.vmem [#allocation8], %s1023_s24  ;;  %s1750_s7 = scalar_lea.hbm %s1795_s3, %s1088_s26 }
 0x15d   : > { %v805_v32 = vadd.f32 %v804_v28, %v758_v5  ;;  %v825_v33 = vadd.f32 %v824_v30, %v818_v29  ;;  %s877_s5 = sshll.u32 %s248_s27, 4  ;;  %s843_s11 = scalar_lea.sflag [#allocation9], %s1681_s10  ;;  %s878_s5 = int_to_ptr.vmem [resolvable:$true] %s877_s5 }
 0x15e   : > { %s1448_s25 = scalar_lea.vmem %s878_s5, 32  ;;  %s1545_s15 = smov [#allocation8]  }
 0x15f   : > { %v806_v35 = vadd.f32 %v805_v32, %v1708_v6  ;;  %v826_v36 = vadd.f32 %v825_v33, %v819_v31  ;;  %p1449_p11 = scmp.ne.s32.totalorder %s878_s5, %s1448_s25  ;;  %s1452_s19 = sshll.u32 %s1545_s15, 4  ;;  %s1453_s19 = int_to_ptr.vmem [resolvable:$false] %s1452_s19 }
 0x160   : > { %s1454_s29 = scalar_lea.vmem %s1453_s19, 64  ;;  %p1455_p7 = scmp.lt.s32.totalorder %s878_s5, %s1453_s19 }
 0x161   : > { %v807_v37 = vrot.slane %v806_v35, 4  ;;  %v827_v38 = vadd.f32 %v826_v36, %v820_v34  ;;  %p1450_p2 = pnand %p1449_p11, %p1652_p13  ;;  %p1456_p4 = scmp.lt.s32.totalorder %s1454_s29, %s1448_s25 }
 0x163   : > { %v808_v39 = vadd.f32 %v807_v37, %v806_v35  ;;  %v828_v40 = vrot.slane %v827_v38, 4  ;;  %p1451_p5 = pneg %p1450_p2  ;;  %p1457_p6 = por %p1456_p4, %p1455_p7 }
 0x165   : > { %v809_v41 = vrot.slane %v808_v39, 2  ;;  %v829_v42 = vadd.f32 %v828_v40, %v827_v38  ;;  %p1458_p9 = pnand %p1457_p6, %p1451_p5 }
 0x167   : > { %v810_v43 = vadd.f32 %v809_v41, %v808_v39  ;;  %v830_v44 = vrot.slane %v829_v42, 2 }
 0x169   : > { %v811_v45 = vrot.slane %v810_v43, 1  ;;  %v831_v46 = vadd.f32 %v830_v44, %v829_v42 }
 0x16b   : > { %v832_v47 = vrot.slane %v831_v46, 1  ;;  %v812_v48 = vadd.f32 %v811_v45, %v810_v43 }
 0x16d   : > { %v833_v49 = vadd.f32 %v832_v47, %v831_v46 }
 0x16f   : > { %v835_v50 = vsel %vm834_vm0, %v812_v48, %v833_v49 }
 0x170   : > { %836 = vst [vmem:[%s248_s27] sm:$0x3] %v835_v50 }
 0x171   : > { %1461 = shalt.err (!%p1458_p9)
}
 0x172   : > { %s1462_s21 = scalar_lea.hbm %s1750_s7, 32  ;;  %s1466_s22 = scalar_lea.hbm %s1795_s3, 64 }
 0x173   : > { %p1463_p12 = scmp.ne.s32.totalorder %s1750_s7, %s1462_s21  ;;  %p1467_p1 = scmp.lt.s32.totalorder %s1750_s7, %s1795_s3 }
 0x174   : > { %p1468_p8 = scmp.lt.s32.totalorder %s1466_s22, %s1462_s21 }
 0x175   : > { %p1464_p0 = pnand %p1463_p12, %p1652_p13 }
 0x176   : > { %p1469_p11 = por %p1468_p8, %p1467_p1 }
 0x177   : > { %p1465_p3 = pneg %p1464_p0 }
 0x179   : > { %p1470_p2 = pnand %p1469_p11, %p1465_p3 }
 0x17b   : > { %1473 = shalt.err (!%p1470_p2)
}
 0x17c   : > { %1257 = dma.vmem_to_hbm [thread:$0]  (%p1652_p13), %s878_s5, 32, %s1750_s7, %s843_s11  }
 0x17d PF: > { %s889_s24 = sand.u32 1, %s1516_s12   ;;  %p1806_p5 = scmp.ne.s32.totalorder %s1800_s23, 0 }
 0x17e   : > { %s890_s26 = scalar_lea.sflag [#allocation4], %s889_s24 }
 0x17f   : > { %p1269_p7 = pnand %p1018_p10, %p1806_p5 }
 0x181   : > { %p1270_p4 = pneg %p1269_p7 }
 0x183   : > { %1507 = dma.done.wait (%p1270_p4), %s890_s26, 512  }
 0x184   : > { %1509 = vsyncadd (%p1270_p4), %s890_s26, 4294966784  ;;  %s899_s27 = scalar_lea.sflag [#allocation9], %s889_s24 }
 0x185   : > { %1511 = dma.done.wait (%p1270_p4), %s899_s27, 32  }
 0x186   : > { %1513 = vsyncadd (%p1270_p4), %s899_s27, 4294967264  ;;  %s24_s17 = sadd.s32 1, %s1536_s17   ;;  %s1807_s12 = smov %s1520_s13 }
 0x187   : > { %p21_p6 = scmp.ge.s32.totalorder %s24_s17, 4   ;;  %s1808_s13 = smov %s1524_s14 }
 0x188   : > { %s1809_s14 = smov %s1661_s18  ;;  %s1810_s15 = smov %s1532_s16 }
 0x189   : > { %s1811_s16 = smov %s1813_s28  ;;  %23 = sbr.rel (!%p21_p6) target bundleno = 9 (0x9), region = 100 }
 0x18e   :  { %904 = vsyncpa [#allocation3], 1 }
 0x18f   :  { %906 = vsyncpa [#allocation3 + $0x1], 1 }
 0x190   :  { %907 = vsyncpa [#allocation6], 1 }
 0x191   :  { %908 = vsyncpa [#allocation4], 1 }
 0x192   :  { %910 = vsyncpa [#allocation4 + $0x1], 1 }
 0x193   :  { %911 = vsyncpa [#allocation9], 1 }
 0x194   :  { %913 = vsyncpa [#allocation9 + $0x1], 1 }

</bundles_post_ra>
